<compile_context>
chip_gen: v7x
topology: tpu7x:2x2x1
jax: 0.10.0
libtpu: 0.0.40
codegen_flags: <defaults>
</compile_context>

<pallas_src>
import functools

import jax
import jax.numpy as jnp
from jax.experimental import pallas as pl
from jax.experimental.pallas import tpu as pltpu


def _avg_pool_kernel(x_ref, o_ref, acc_ref, *, reduce_axis, hw_total, hw_tile):
    """Running spatial-sum over the HW grid axis; finalize mean on last step.

    x_ref : (Bt, C, HWt)  [NCHW path, reduce_axis=2]  or
            (Bt, HWt, C)  [NHWC path, reduce_axis=1]
    o_ref : (Bt, C)
    acc_ref: (Bt, C) f32 scratch, resident across the HW grid axis.
    """
    k = pl.program_id(1)

    @pl.when(k == 0)
    def _init():
        acc_ref[...] = jnp.zeros_like(acc_ref)

    x = x_ref[...].astype(jnp.float32)

    # Mask the padded tail of the last spatial tile (only if HW % HWt != 0).
    if hw_total % hw_tile != 0:
        start = k * hw_tile
        pos = jax.lax.broadcasted_iota(jnp.int32, x.shape, reduce_axis) + start
        x = jnp.where(pos < hw_total, x, 0.0)

    acc_ref[...] += jnp.sum(x, axis=reduce_axis)

    @pl.when(k == pl.num_programs(1) - 1)
    def _finish():
        o_ref[...] = (acc_ref[...] * (1.0 / hw_total)).astype(o_ref.dtype)


def _pick_hw_tile(hw, bt, c, itemsize, mult, max_block_bytes):
    """Largest spatial tile (multiple of `mult`, or full HW) whose input block
    stays under max_block_bytes (the pipeline double-buffers it)."""
    if bt * c * hw * itemsize <= max_block_bytes:
        return hw
    hwt = max_block_bytes // (bt * c * itemsize)
    hwt = max(mult, (hwt // mult) * mult)
    return min(hwt, hw)


def _avg_pool_2d(x3, B, C, HW, reduce_axis, hw_mult, max_block_bytes):
    """x3: (B, C, HW) or (B, HW, C) -> (B, C) spatial mean via Pallas."""
    # Batch tile: full B if small, else 8 (multiple of 8 -> unmasked output
    # stores; out-of-bounds rows of a padded last block are dropped by Pallas).
    Bt = B if B <= 8 else 8
    HWt = _pick_hw_tile(HW, Bt, C, x3.dtype.itemsize, hw_mult, max_block_bytes)

    nb = pl.cdiv(B, Bt)
    nk = pl.cdiv(HW, HWt)

    if reduce_axis == 2:                       # NCHW: (B, C, HW), HW on lanes
        in_block = (Bt, C, HWt)
        in_map = lambda b, k: (b, 0, k)
    else:                                      # NHWC: (B, HW, C), C on lanes
        in_block = (Bt, HWt, C)
        in_map = lambda b, k: (b, k, 0)

    kernel = functools.partial(
        _avg_pool_kernel, reduce_axis=reduce_axis, hw_total=HW, hw_tile=HWt)

    return pl.pallas_call(
        kernel,
        out_shape=jax.ShapeDtypeStruct((B, C), x3.dtype),
        grid_spec=pltpu.PrefetchScalarGridSpec(
            num_scalar_prefetch=0,
            grid=(nb, nk),
            in_specs=[pl.BlockSpec(in_block, in_map)],
            out_specs=pl.BlockSpec((Bt, C), lambda b, k: (b, 0)),
            scratch_shapes=[pltpu.VMEM((Bt, C), jnp.float32)],
        ),
        compiler_params=pltpu.CompilerParams(
            dimension_semantics=("parallel", "arbitrary")),
    )(x3)


def fast_adaptive_avg_pool(x, flatten: bool = False, input_fmt: str = "NCHW",
                           *, max_block_bytes: int = 2 << 20):
    """JAX/Pallas equivalent of FastAdaptiveAvgPool.forward.

    x: (B, C, H, W) if input_fmt == 'NCHW', else (B, H, W, C).
    Returns (B, C) if flatten, else (B, C, 1, 1) for NCHW / (B, 1, 1, C) for
    NHWC, matching the PyTorch module.
    """
    if input_fmt == "NCHW":
        B, C, H, W = x.shape
        HW = H * W
        x3 = x.reshape(B, C, HW)        # free reshape, no transpose
        out = _avg_pool_2d(x3, B, C, HW, reduce_axis=2, hw_mult=128,
                           max_block_bytes=max_block_bytes)
        return out if flatten else out.reshape(B, C, 1, 1)
    elif input_fmt == "NHWC":
        B, H, W, C = x.shape
        HW = H * W
        x3 = x.reshape(B, HW, C)        # free reshape
        out = _avg_pool_2d(x3, B, C, HW, reduce_axis=1, hw_mult=8,
                           max_block_bytes=max_block_bytes)
        return out if flatten else out.reshape(B, 1, 1, C)
    else:
        raise ValueError(f"unsupported input_fmt {input_fmt}")


if __name__ == "__main__":
    key = jax.random.PRNGKey(0)
    B, C, H, W = 2, 4, 16, 16
    x = jax.random.normal(key, (B, C, H, W), dtype=jnp.float32)

    # NCHW, keepdim (flatten=False)
    out = jax.block_until_ready(
        fast_adaptive_avg_pool(x, flatten=False, input_fmt="NCHW"))
    ref = jnp.mean(x, axis=(2, 3), keepdims=True)      # (B, C, 1, 1)
    assert out.shape == (B, C, 1, 1), out.shape
    assert jnp.allclose(out, ref, atol=1e-5, rtol=1e-5)

    # NCHW, flatten=True
    out_flat = jax.block_until_ready(
        fast_adaptive_avg_pool(x, flatten=True, input_fmt="NCHW"))
    assert out_flat.shape == (B, C)
    assert jnp.allclose(out_flat, ref.reshape(B, C), atol=1e-5, rtol=1e-5)

    # NHWC path
    x_nhwc = jnp.transpose(x, (0, 2, 3, 1))
    out_nhwc = jax.block_until_ready(
        fast_adaptive_avg_pool(x_nhwc, flatten=False, input_fmt="NHWC"))
    ref_nhwc = jnp.mean(x_nhwc, axis=(1, 2), keepdims=True)
    assert out_nhwc.shape == (B, 1, 1, C)
    assert jnp.allclose(out_nhwc, ref_nhwc, atol=1e-5, rtol=1e-5)

    # Force the tiled-HW + masked-tail path (HW=144, tile=128 -> 2 k-steps).
    x_ragged = jax.random.normal(key, (B, C, 12, 12), dtype=jnp.float32)
    out_r = jax.block_until_ready(
        fast_adaptive_avg_pool(x_ragged, flatten=True, input_fmt="NCHW",
                               max_block_bytes=4096))
    ref_r = jnp.mean(x_ragged, axis=(2, 3))
    assert out_r.shape == (B, C)
    assert jnp.allclose(out_r, ref_r, atol=1e-5, rtol=1e-5)

    print("KERNEL_OK")
</pallas_src>

<mosaic_0001>
module attributes {stable_mosaic.version = 11 : i64} {
  func.func @_avg_pool_kernel(%arg0: i32, %arg1: i32, %arg2: memref<2x4x256xf32, #tpu.memory_space<vmem>>, %arg3: memref<2x4xf32, #tpu.memory_space<vmem>>, %arg4: memref<2x4xf32, #tpu.memory_space<vmem>>) attributes {dimension_semantics = [#tpu.dimension_semantics<parallel>, #tpu.dimension_semantics<arbitrary>], iteration_bounds = array<i64: 1, 1>, scalar_prefetch = 0 : i64, scratch_operands = 1 : i64, tpu.core_type = #tpu.core_type<tc>, window_params = [{transform_indices = @transform_0, window_bounds = array<i64: 2, 4, 256>}, {transform_indices = @transform_1, window_bounds = array<i64: 2, 4>}]} {
    %c0_i32 = arith.constant 0 : i32
    %0 = arith.cmpi eq, %arg1, %c0_i32 : i32
    %1 = arith.extui %0 : i1 to i32
    %c0_i32_0 = arith.constant 0 : i32
    %2 = arith.cmpi ne, %1, %c0_i32_0 : i32
    scf.if %2 {
      %cst_9 = arith.constant 0.000000e+00 : f32
      %11 = vector.broadcast %cst_9 : f32 to vector<2x4xf32>
      %c0_10 = arith.constant 0 : index
      %c0_11 = arith.constant 0 : index
      %12 = vector.load %arg4[%c0_10, %c0_11] : memref<2x4xf32, #tpu.memory_space<vmem>>, vector<2x4xf32>
      tpu.vector_store %arg4[%c0_10, %c0_11], %11 {strides = array<i32>} : memref<2x4xf32, #tpu.memory_space<vmem>>, vector<2x4xf32>,
    } else {
    }
    %c0 = arith.constant 0 : index
    %c0_1 = arith.constant 0 : index
    %c0_2 = arith.constant 0 : index
    %3 = vector.load %arg2[%c0, %c0_1, %c0_2] : memref<2x4x256xf32, #tpu.memory_space<vmem>>, vector<2x4x256xf32>
    %c0_3 = arith.constant 0 : index
    %c0_4 = arith.constant 0 : index
    %4 = vector.load %arg4[%c0_3, %c0_4] : memref<2x4xf32, #tpu.memory_space<vmem>>, vector<2x4xf32>
    %cst = arith.constant dense<0.000000e+00> : vector<2x4xf32>
    %5 = vector.multi_reduction <add>, %3, %cst [2] : vector<2x4x256xf32> to vector<2x4xf32>
    %6 = arith.addf %4, %5 : vector<2x4xf32>
    %c0_5 = arith.constant 0 : index
    %c0_6 = arith.constant 0 : index
    %7 = vector.load %arg4[%c0_5, %c0_6] : memref<2x4xf32, #tpu.memory_space<vmem>>, vector<2x4xf32>
    tpu.vector_store %arg4[%c0_5, %c0_6], %6 {strides = array<i32>} : memref<2x4xf32, #tpu.memory_space<vmem>>, vector<2x4xf32>,
    %c0_i32_7 = arith.constant 0 : i32
    %8 = arith.cmpi eq, %arg1, %c0_i32_7 : i32
    %9 = arith.extui %8 : i1 to i32
    %c0_i32_8 = arith.constant 0 : i32
    %10 = arith.cmpi ne, %9, %c0_i32_8 : i32
    scf.if %10 {
      %c0_9 = arith.constant 0 : index
      %c0_10 = arith.constant 0 : index
      %11 = vector.load %arg4[%c0_9, %c0_10] : memref<2x4xf32, #tpu.memory_space<vmem>>, vector<2x4xf32>
      %cst_11 = arith.constant 3.906250e-03 : f32
      %12 = vector.broadcast %cst_11 : f32 to vector<2x4xf32>
      %13 = arith.mulf %11, %12 : vector<2x4xf32>
      %c0_12 = arith.constant 0 : index
      %c0_13 = arith.constant 0 : index
      %14 = vector.load %arg3[%c0_12, %c0_13] : memref<2x4xf32, #tpu.memory_space<vmem>>, vector<2x4xf32>
      tpu.vector_store %arg3[%c0_12, %c0_13], %13 {strides = array<i32>} : memref<2x4xf32, #tpu.memory_space<vmem>>, vector<2x4xf32>,
    } else {
    }
    return
  }
  func.func @transform_0(%arg0: i32, %arg1: i32) -> (i32, i32, i32) {
    %c0_i32 = arith.constant 0 : i32
    %c0_i32_0 = arith.constant 0 : i32
    return %arg0, %c0_i32, %arg1 : i32, i32, i32
  }
  func.func @transform_1(%arg0: i32, %arg1: i32) -> (i32, i32) {
    %c0_i32 = arith.constant 0 : i32
    %c0_i32_0 = arith.constant 0 : i32
    return %arg0, %c0_i32 : i32, i32
  }
}

</mosaic_0001>

<bundles_post_ra>
// kernel: tpu_custom_call.1
= control target key start
LH: loop header
LB: loop body
LE: loop exit
PB: predicated region body
PF: predicated region fallthrough
CT: control target
= control target key end

     0   :  { %6 = vsyncpa [#allocation4], 0  ;;  %s185_s0 = inlined_call_operand.hbm [shape: f32[2,4,256], index: 0, kind: input, shape index: {}]   ;;  %s186_s1 = inlined_call_operand.hbm [shape: f32[2,4], index: 1, kind: output, shape index: {}]  }
   0x1   :  { %7 = vsyncpa [#allocation5], 0  ;;  %s143_s6 = smov [#allocation3]   ;;  %s95_s10 = scalar_lea.hbm %s185_s0, 256 }
   0x2   :  { %s13_s7 = sshll.u32 %s143_s6, 4  ;;  %p96_p0 = scmp.ne.s32.totalorder %s185_s0, %s95_s10  ;;  %s14_s7 = int_to_ptr.vmem [resolvable:$true] %s13_s7 }
   0x3   :  { %p99_p1 = scmp.lt.u32.totalorder %s95_s10, %s185_s0 }
   0x5   :  { %p101_p2 = pnand %p99_p1, %p96_p0 }
   0x7   :  { %104 = shalt.err (!%p101_p2)
}
   0x8   :  { %s105_s15 = scalar_lea.vmem %s14_s7, 256  ;;  %p110_p4 = scmp.lt.s32.totalorder %s14_s7, %s14_s7 }
   0x9   :  { %p106_p3 = scmp.ne.s32.totalorder %s14_s7, %s105_s15  ;;  %p111_p5 = scmp.lt.s32.totalorder %s105_s15, %s105_s15 }
   0xb   :  { %p112_p6 = por %p111_p5, %p110_p4 }
   0xd   :  { %p113_p7 = pnand %p112_p6, %p106_p3 }
   0xf   :  { %116 = shalt.err (!%p113_p7)
}
  0x10   :  { %s144_s16 = smov 128   ;;  %s145_s17 = smov 8  }
  0x11   :  { %19 = dma.hbm_to_vmem [thread:$0]  %s185_s0, 256, %s14_s7, [#allocation4], %s144_s16, %s144_s16, %s145_s17  }
  0x12   :  { %139 = dma.done.wait [#allocation4], 256  }
  0x13   :  { %140 = vsyncadd [#allocation4], 4294967040  ;;  %vm38_vm0 = vcmask 1043456   ;;  %v29_v0 = vld [vmem:[#allocation3] sm:$0xff]  ;;  %v30_v1 = vld [vmem:[#allocation3 + $0x8] sm:$0xff]  ;;  %vm27_vm1 = vcmask 25600   ;;  %v51_v11 = vlaneseq }
  0x14   :  { %v34_v2 = vcombine.high %v29_v0, %v29_v0  ;;  %v39_v3 = vsel %vm38_vm0, %v29_v0, 0.0  ;;  %v35_v4 = vcombine.high %v30_v1, %v30_v1  ;;  %v44_v6 = vsel %vm38_vm0, %v30_v1, 0.0  ;;  %s147_s0 = smov [#allocation6]  }
  0x15   :  { %v146_v10 = vmov 0.0   ;;  %v52_v12 = vand.u32 127, %v51_v11  ;;  %v54_v13 = vshrl.u32 %v51_v11, 7  ;;  %vm61_vm2 = vcmask 1041409   ;;  %s79_s20 = sshll.u32 %s147_s0, 4  ;;  %s80_s20 = int_to_ptr.vmem [resolvable:$true] %s79_s20 }
  0x16   :  { %v40_v5 = vsel %vm38_vm0, %v34_v2, 0.0  ;;  %v45_v7 = vsel %vm38_vm0, %v35_v4, 0.0  ;;  %28 = vst.msk [vmem:[#allocation2] sm:$0x3] %vm27_vm1, %v146_v10  ;;  %s117_s21 = scalar_lea.vmem %s80_s20, 32  ;;  %p122_p9 = scmp.lt.s32.totalorder %s80_s20, %s80_s20 }
  0x17   :  { %v41_v8 = vadd.f32 %v40_v5, %v39_v3  ;;  %v46_v9 = vadd.f32 %v45_v7, %v44_v6  ;;  %v55_v15 = vsub.s32 %v52_v12, %v54_v13  ;;  %p118_p8 = scmp.ne.s32.totalorder %s80_s20, %s117_s21  ;;  %p123_p10 = scmp.lt.s32.totalorder %s117_s21, %s117_s21 }
  0x19   :  { %42 = vadd.xlane.f32.xlu0 %v41_v8  ;;  %p124_p11 = por %p123_p10, %p122_p9 }
  0x1b   :  { %p125_p12 = pnand %p124_p11, %p118_p8 }
  0x1d   :  { %47 = vadd.xlane.f32.xlu0 %v46_v9  ;;  %v31_v19 = vld [vmem:[#allocation2] sm:$0x3] }
  0xa6   :  { %v43_v14 = vpop.xlane.xlu0 %42 }
  0xa7   :  { %v56_v17 = vrot.slane %v43_v14, %v55_v15 }
  0xaa   :  { %v48_v16 = vpop.xlane.xlu0 %47 }
  0xab   :  { %v60_v18 = vrot.slane %v48_v16, %v55_v15 }
  0xad   :  { %v62_v20 = vsel %vm61_vm2, %v60_v18, %v56_v17 }
  0xae   :  { %v64_v21 = vadd.f32 %v62_v20, %v31_v19 }
  0xb0   :  { %66 = vst.msk [vmem:[#allocation2] sm:$0x3] %vm27_vm1, %v64_v21 }
  0xb7   :  { %v70_v22 = vld [vmem:[#allocation2] sm:$0x3] }
  0xb8   :  { %v71_v23 = vmul.f32 0.00390625, %v70_v22 }
  0xba   :  { %72 = vst.msk [vmem:[#allocation6] sm:$0x3] %vm27_vm1, %v71_v23 }
  0xbb   :  { %128 = shalt.err (!%p125_p12)
}
  0xbc   :  { %s129_s24 = scalar_lea.hbm %s186_s1, 32 }
  0xbd   :  { %p130_p13 = scmp.ne.s32.totalorder %s186_s1, %s129_s24  ;;  %p133_p0 = scmp.lt.u32.totalorder %s129_s24, %s186_s1 }
  0xbf   :  { %p135_p1 = pnand %p133_p0, %p130_p13 }
  0xc1   :  { %138 = shalt.err (!%p135_p1)
}
  0xc2   :  { %82 = dma.vmem_to_hbm [thread:$0]  %s80_s20, 32, %s186_s1, [#allocation5]  }
  0xc3   :  { %141 = dma.done.wait [#allocation5], 32  }
  0xc4   :  { %142 = vsyncadd [#allocation5], 4294967264 }
  0xc5   :  { %86 = vsyncpa [#allocation4], 1 }
  0xc6   :  { %87 = vsyncpa [#allocation5], 1 }

</bundles_post_ra>
